<compile_context>
chip_gen: v5e
topology: v5e:2x2
jax: 0.10.0
libtpu: 0.0.40
codegen_flags: <defaults>
</compile_context>

<pallas_src>
import math

import jax
import jax.numpy as jnp
from jax.experimental import pallas as pl
from jax.experimental.pallas import tpu as pltpu


def _round_up(x, m):
    return ((x + m - 1) // m) * m


def _head_kernel(x_ref, w1_ref, b1_ref, w2_ref, b2_ref, o_ref):
    # x_ref: [TB, H] (f32 or bf16), w1_ref: [H, H], b1_ref: [1, H] f32,
    # w2_ref: [H, L_pad], b2_ref: [1, L_pad] f32, o_ref: [TB, L_pad] f32.
    x = x_ref[...]

    # dense: x @ W1 + b1  (MXU, f32 accumulation; bias add in f32)
    h = jnp.dot(x, w1_ref[...], preferred_element_type=jnp.float32) + b1_ref[...]

    # exact (erf) GELU in f32, matching HF get_activation('gelu') / nn.GELU default
    g = 0.5 * h * (1.0 + jax.lax.erf(h * (1.0 / math.sqrt(2.0))))

    # out_proj: g @ W2 + b2  (cast g back to the weight dtype for the MXU,
    # accumulate in f32, bias add in f32)
    out = (
        jnp.dot(g.astype(w2_ref.dtype), w2_ref[...], preferred_element_type=jnp.float32)
        + b2_ref[...]
    )
    o_ref[...] = out.astype(o_ref.dtype)


def electra_classification_head(features, w1, b1, w2, b2, *, tb=256, compute_dtype=None):
    """features: [B, S, H] -> logits [B, num_labels] (float32).

    tb:            max batch tile (rounded to a sublane multiple).
    compute_dtype: dtype used for x/W1/W2 on the MXU (default: features.dtype).
                   Accumulation, bias add, GELU and the output stay float32.
    """
    B, S, H = features.shape
    L = w2.shape[1]

    if compute_dtype is None:
        compute_dtype = features.dtype
    compute_dtype = jnp.dtype(compute_dtype)

    # CLS-token slice (wrapper glue; dropout is identity in eval mode).
    x = features[:, 0, :].astype(compute_dtype)               # [B, H]
    w1c = w1.astype(compute_dtype)                            # [H, H]
    w2c = w2.astype(compute_dtype)                            # [H, L]
    b1f = b1.astype(jnp.float32).reshape(1, H)                # [1, H]

    # Pad the label dim to a full 128-lane vreg: lane-dense stores, clean MXU tile.
    L_pad = _round_up(max(L, 128), 128)
    w2p = jnp.zeros((H, L_pad), compute_dtype).at[:, :L].set(w2c)
    b2p = jnp.zeros((1, L_pad), jnp.float32).at[0, :L].set(b2.astype(jnp.float32))

    # Batch tile: multiple of the sublane width (8 for f32, 16 for bf16), capped at tb.
    sublane = 16 if compute_dtype == jnp.dtype(jnp.bfloat16) else 8
    TB = min(_round_up(tb, sublane), _round_up(B, sublane))
    B_pad = _round_up(B, TB)
    if B_pad != B:
        x = jnp.pad(x, ((0, B_pad - B), (0, 0)))

    grid = (B_pad // TB,)

    out = pl.pallas_call(
        _head_kernel,
        out_shape=jax.ShapeDtypeStruct((B_pad, L_pad), jnp.float32),
        grid=grid,
        in_specs=[
            pl.BlockSpec((TB, H), lambda i: (i, 0)),        # x: tiled over batch
            pl.BlockSpec((H, H), lambda i: (0, 0)),         # W1: resident across steps
            pl.BlockSpec((1, H), lambda i: (0, 0)),         # b1: resident
            pl.BlockSpec((H, L_pad), lambda i: (0, 0)),     # W2: resident
            pl.BlockSpec((1, L_pad), lambda i: (0, 0)),     # b2: resident
        ],
        out_specs=pl.BlockSpec((TB, L_pad), lambda i: (i, 0)),
        compiler_params=pltpu.CompilerParams(
            # Batch tiles are independent -> shardable across v7x's 2 TensorCores.
            dimension_semantics=("parallel",),
            # Explicit budget that fits v7x's 64 MiB VMEM (and is valid on v5e/v6e).
            vmem_limit_bytes=48 * 1024 * 1024,
        ),
    )(x, w1c, b1f, w2p, b2p)

    # Strip batch/label padding; keep logits in f32.
    return out[:B, :L]


def _reference(features, w1, b1, w2, b2):
    x = features[:, 0, :].astype(jnp.float32)
    h = x @ w1.astype(jnp.float32) + b1.astype(jnp.float32)
    g = 0.5 * h * (1.0 + jax.lax.erf(h / jnp.sqrt(2.0)))
    return g @ w2.astype(jnp.float32) + b2.astype(jnp.float32)


if __name__ == "__main__":
    key = jax.random.PRNGKey(0)
    keys = jax.random.split(key, 10)

    # ---------------- Test 1: tiny config (f32, tight tolerance) ----------------
    B, S, H, L = 2, 8, 32, 4
    features = jax.random.normal(keys[0], (B, S, H), dtype=jnp.float32)
    w1 = jax.random.normal(keys[1], (H, H), dtype=jnp.float32) * (1.0 / math.sqrt(H))
    b1 = jax.random.normal(keys[2], (H,), dtype=jnp.float32) * 0.02
    w2 = jax.random.normal(keys[3], (H, L), dtype=jnp.float32) * (1.0 / math.sqrt(H))
    b2 = jax.random.normal(keys[4], (L,), dtype=jnp.float32) * 0.02

    out = jax.block_until_ready(electra_classification_head(features, w1, b1, w2, b2))
    ref = _reference(features, w1, b1, w2, b2)
    assert out.shape == (B, L)
    assert jnp.allclose(out, ref, atol=1e-5, rtol=1e-5), "f32 mismatch vs reference"

    # ------- Test 2: multi-tile grid + bf16 weights/activations (loose check) -------
    B2, S2, H2, L2 = 32, 8, 128, 3
    f2 = jax.random.normal(keys[5], (B2, S2, H2), dtype=jnp.float32)
    w1b = jax.random.normal(keys[6], (H2, H2), dtype=jnp.float32) * (1.0 / math.sqrt(H2))
    b1b = jax.random.normal(keys[7], (H2,), dtype=jnp.float32) * 0.02
    w2b = jax.random.normal(keys[8], (H2, L2), dtype=jnp.float32) * (1.0 / math.sqrt(H2))
    b2b = jax.random.normal(keys[9], (L2,), dtype=jnp.float32) * 0.02

    out2 = electra_classification_head(
        f2, w1b, b1b, w2b, b2b, tb=16, compute_dtype=jnp.bfloat16
    )
    out2 = jax.block_until_ready(out2)
    ref2 = _reference(f2, w1b, b1b, w2b, b2b)
    assert out2.shape == (B2, L2)
    assert jnp.allclose(out2, ref2, atol=1e-1, rtol=1e-1), "bf16 mismatch vs reference"

    print("KERNEL_OK")
</pallas_src>

<mosaic_0001>
module attributes {stable_mosaic.version = 11 : i64} {
  func.func @_head_kernel(%arg0: i32, %arg1: memref<8x32xf32, #tpu.memory_space<vmem>>, %arg2: memref<32x32xf32, #tpu.memory_space<vmem>>, %arg3: memref<1x32xf32, #tpu.memory_space<vmem>>, %arg4: memref<32x128xf32, #tpu.memory_space<vmem>>, %arg5: memref<1x128xf32, #tpu.memory_space<vmem>>, %arg6: memref<8x128xf32, #tpu.memory_space<vmem>>) attributes {dimension_semantics = [#tpu.dimension_semantics<parallel>], iteration_bounds = array<i64: 1>, scalar_prefetch = 0 : i64, scratch_operands = 0 : i64, tpu.core_type = #tpu.core_type<tc>, window_params = [{transform_indices = @transform_0, window_bounds = array<i64: 8, 32>}, {pipeline_mode = #tpu.pipeline_mode<synchronous>, transform_indices = @transform_1, window_bounds = array<i64: 32, 32>}, {pipeline_mode = #tpu.pipeline_mode<synchronous>, transform_indices = @transform_2, window_bounds = array<i64: 1, 32>}, {pipeline_mode = #tpu.pipeline_mode<synchronous>, transform_indices = @transform_3, window_bounds = array<i64: 32, 128>}, {pipeline_mode = #tpu.pipeline_mode<synchronous>, transform_indices = @transform_4, window_bounds = array<i64: 1, 128>}, {transform_indices = @transform_5, window_bounds = array<i64: 8, 128>}]} {
    %c0 = arith.constant 0 : index
    %c0_0 = arith.constant 0 : index
    %0 = vector.load %arg1[%c0, %c0_0] : memref<8x32xf32, #tpu.memory_space<vmem>>, vector<8x32xf32>
    %c0_1 = arith.constant 0 : index
    %c0_2 = arith.constant 0 : index
    %1 = vector.load %arg2[%c0_1, %c0_2] : memref<32x32xf32, #tpu.memory_space<vmem>>, vector<32x32xf32>
    %cst = arith.constant dense<0.000000e+00> : vector<8x32xf32>
    %2 = tpu.matmul %0, %1, %cst {dimension_numbers = #tpu.dot_dimension_numbers<[1], [0], [0], [1], [0, 0, 1, 1], [], []>} : vector<8x32xf32>, vector<32x32xf32>, vector<8x32xf32> -> vector<8x32xf32>
    %c0_3 = arith.constant 0 : index
    %c0_4 = arith.constant 0 : index
    %3 = vector.load %arg3[%c0_3, %c0_4] : memref<1x32xf32, #tpu.memory_space<vmem>>, vector<1x32xf32>
    %4 = vector.broadcast %3 : vector<1x32xf32> to vector<8x32xf32>
    %5 = arith.addf %2, %4 : vector<8x32xf32>
    %cst_5 = arith.constant 5.000000e-01 : f32
    %6 = vector.broadcast %cst_5 : f32 to vector<8x32xf32>
    %7 = arith.mulf %6, %5 : vector<8x32xf32>
    %cst_6 = arith.constant 0.707106769 : f32
    %8 = vector.broadcast %cst_6 : f32 to vector<8x32xf32>
    %9 = arith.mulf %5, %8 : vector<8x32xf32>
    %10 = math.erf %9 : vector<8x32xf32>
    %cst_7 = arith.constant 1.000000e+00 : f32
    %11 = vector.broadcast %cst_7 : f32 to vector<8x32xf32>
    %12 = arith.addf %11, %10 : vector<8x32xf32>
    %13 = arith.mulf %7, %12 : vector<8x32xf32>
    %c0_8 = arith.constant 0 : index
    %c0_9 = arith.constant 0 : index
    %14 = vector.load %arg4[%c0_8, %c0_9] : memref<32x128xf32, #tpu.memory_space<vmem>>, vector<32x128xf32>
    %cst_10 = arith.constant dense<0.000000e+00> : vector<8x128xf32>
    %15 = tpu.matmul %13, %14, %cst_10 {dimension_numbers = #tpu.dot_dimension_numbers<[1], [0], [0], [1], [0, 0, 1, 1], [], []>} : vector<8x32xf32>, vector<32x128xf32>, vector<8x128xf32> -> vector<8x128xf32>
    %c0_11 = arith.constant 0 : index
    %c0_12 = arith.constant 0 : index
    %16 = vector.load %arg5[%c0_11, %c0_12] : memref<1x128xf32, #tpu.memory_space<vmem>>, vector<1x128xf32>
    %17 = vector.broadcast %16 : vector<1x128xf32> to vector<8x128xf32>
    %18 = arith.addf %15, %17 : vector<8x128xf32>
    %c0_13 = arith.constant 0 : index
    %c0_14 = arith.constant 0 : index
    %19 = vector.load %arg6[%c0_13, %c0_14] : memref<8x128xf32, #tpu.memory_space<vmem>>, vector<8x128xf32>
    tpu.vector_store %arg6[%c0_13, %c0_14], %18 {strides = array<i32>} : memref<8x128xf32, #tpu.memory_space<vmem>>, vector<8x128xf32>,
    return
  }
  func.func @transform_0(%arg0: i32) -> (i32, i32) {
    %c0_i32 = arith.constant 0 : i32
    %c0_i32_0 = arith.constant 0 : i32
    return %arg0, %c0_i32 : i32, i32
  }
  func.func @transform_1(%arg0: i32) -> (i32, i32) {
    %c0_i32 = arith.constant 0 : i32
    %c0_i32_0 = arith.constant 0 : i32
    %c0_i32_1 = arith.constant 0 : i32
    return %c0_i32, %c0_i32_0 : i32, i32
  }
  func.func @transform_2(%arg0: i32) -> (i32, i32) {
    %c0_i32 = arith.constant 0 : i32
    %c0_i32_0 = arith.constant 0 : i32
    %c0_i32_1 = arith.constant 0 : i32
    return %c0_i32, %c0_i32_0 : i32, i32
  }
  func.func @transform_3(%arg0: i32) -> (i32, i32) {
    %c0_i32 = arith.constant 0 : i32
    %c0_i32_0 = arith.constant 0 : i32
    %c0_i32_1 = arith.constant 0 : i32
    return %c0_i32, %c0_i32_0 : i32, i32
  }
  func.func @transform_4(%arg0: i32) -> (i32, i32) {
    %c0_i32 = arith.constant 0 : i32
    %c0_i32_0 = arith.constant 0 : i32
    %c0_i32_1 = arith.constant 0 : i32
    return %c0_i32, %c0_i32_0 : i32, i32
  }
  func.func @transform_5(%arg0: i32) -> (i32, i32) {
    %c0_i32 = arith.constant 0 : i32
    %c0_i32_0 = arith.constant 0 : i32
    return %arg0, %c0_i32 : i32, i32
  }
}

</mosaic_0001>

<bundles_post_ra>
// kernel: tpu_custom_call.1
= control target key start
LH: loop header
LB: loop body
LE: loop exit
PB: predicated region body
PF: predicated region fallthrough
CT: control target
= control target key end

     0   :  { %10 = vsyncpa [#allocation3], 0  ;;  %s364_s0 = inlined_call_operand.hbm [shape: f32[8,32], index: 0, kind: input, shape index: {}]   ;;  %s365_s1 = inlined_call_operand.hbm [shape: f32[32,32], index: 1, kind: input, shape index: {}]   ;;  %s366_s2 = inlined_call_operand.vmem [shape: f32[1,32], index: 2, kind: input, shape index: {}]   ;;  %s367_s3 = inlined_call_operand.hbm [shape: f32[32,128], index: 3, kind: input, shape index: {}]   ;;  %s368_s4 = inlined_call_operand.vmem [shape: f32[1,128], index: 4, kind: input, shape index: {}]   ;;  %s369_s5 = inlined_call_operand.hbm [shape: f32[8,128], index: 5, kind: output, shape index: {}]  }
   0x1   :  { %11 = vsyncpa [#allocation6], 0  ;;  %s28_s20 = sshll.u32 %s365_s1, 4  ;;  %s29_s20 = int_to_ptr.hbm [resolvable:$true] %s28_s20 }
   0x2   :  { %12 = vsyncpa [#allocation4], 0  ;;  %s308_s21 = smov [#allocation5]   ;;  %s18_s25 = sshll.u32 %s364_s0, 4  ;;  %s19_s25 = int_to_ptr.hbm [resolvable:$true] %s18_s25 }
   0x3   :  { %s30_s22 = sshll.u32 %s308_s21, 4  ;;  %s309_s26 = smov 128   ;;  %s31_s22 = int_to_ptr.vmem [resolvable:$true] %s30_s22 }
   0x4   :  { %s310_s27 = smov 8   ;;  %s311_s28 = smov [#allocation2]  }
   0x5   :  { %36 = dma.hbm_to_vmem [thread:$0]  %s29_s20, 512, %s31_s22, [#allocation6], %s309_s26, %s309_s26, %s310_s27  }
   0x6   :  { %s20_s29 = sshll.u32 %s311_s28, 4  ;;  %s43_s7 = sshll.u32 %s367_s3, 4  ;;  %s21_s29 = int_to_ptr.vmem [resolvable:$true] %s20_s29  ;;  %s44_s7 = int_to_ptr.hbm [resolvable:$true] %s43_s7 }
   0x7   :  { %23 = dma.hbm_to_vmem [thread:$0]  %s19_s25, 128, %s21_s29, [#allocation3]  }
   0x8   :  { %s312_s1 = smov [#allocation7]  }
   0x9   :  { %s45_s8 = sshll.u32 %s312_s1, 4  ;;  %s46_s8 = int_to_ptr.vmem [resolvable:$true] %s45_s8 }
   0xa   :  { %51 = dma.hbm_to_vmem [thread:$0]  %s44_s7, 512, %s46_s8, [#allocation6], %s309_s26, %s309_s26, %s310_s27  }
   0xb   :  { %302 = dma.done.wait [#allocation3], 128  }
   0xc   :  { %303 = vsyncadd [#allocation3], 4294967168 }
   0xd   :  { %304 = dma.done.wait [#allocation6], 1024  }
   0xe   :  { %305 = vsyncadd [#allocation6], 4294966272  ;;  %v70_v0 = vld [vmem:[#allocation5 + $0x18] sm:$0xff]  ;;  %v69_v1 = vld [vmem:[#allocation5 + $0x10] sm:$0xff]  ;;  %vm75_vm0 = vcmask 261120   ;;  %s313_s10 = smov [#allocation8]  }
   0xf   :  { %91 = vmatpush.msra.mxu0 %v70_v0  ;;  %v68_v2 = vld [vmem:[#allocation5 + $0x8] sm:$0xff]  ;;  %v67_v3 = vld [vmem:[#allocation5] sm:$0xff]  ;;  %v66_v4 = vld [vmem:[#allocation2] sm:$0xff]  ;;  %s180_s11 = sshll.u32 %s313_s10, 4  ;;  %s182_s14 = sshll.u32 %s369_s5, 4  ;;  %s181_s11 = int_to_ptr.vmem [resolvable:$true] %s180_s11  ;;  %s183_s14 = int_to_ptr.hbm [resolvable:$true] %s182_s14 }
  0x10   :  { %v202_v5 = vld [vmem:[%s366_s2] ss:$0 sm:$0xff]  ;;  %v145_v18 = vld [vmem:[#allocation7 + $0x10] sm:$0xff]  ;;  %v144_v21 = vld [vmem:[#allocation7 + $0x8] sm:$0xff] }
  0x11   :  { %92 = vmatpush.msra.mxu0 %v69_v1  ;;  %v146_v17 = vld [vmem:[#allocation7 + $0x18] sm:$0xff]  ;;  %v143_v23 = vld [vmem:[#allocation7] sm:$0xff] }
  0x12   :  { %166 = vmatpush.msra.mxu1 %v146_v17  ;;  %v203_v51 = vld [vmem:[%s368_s4] ss:$0 sm:$0xff] }
  0x13   :  { %93 = vmatpush.msra.mxu0 %v68_v2 }
  0x14   :  { %167 = vmatpush.msra.mxu1 %v145_v18 }
  0x15   :  { %94 = vmatpush.msra.mxu0 %v67_v3 }
  0x16   :  { %193 = vmatmul.msk.f32.vlgmr.msra.gmra.mxu0 %vm75_vm0, %v66_v4  ;;  %168 = vmatpush.msra.mxu1 %v144_v21 }
  0x18   :  { %169 = vmatpush.msra.mxu1 %v143_v23 }
  0x93   :  { %v96_v6 = vpop.f32.mrf.mxu0 }
  0x94   :  { %v97_v7 = vadd.f32 %v202_v5, %v96_v6 }
  0x96   :  { %v100_v8 = vmul.f32 0.70710677, %v97_v7  ;;  %v99_v48 = vmul.f32 0.5, %v97_v7 }
  0x98   :  { %v101_v9 = vmul.f32 %v100_v8, %v100_v8 }
  0x9a   :  { %v102_v10 = vmin.f32 %v101_v9, 16.0 }
  0x9c   :  { %v103_v11 = vmul.f32 2.1237322e-06, %v102_v10  ;;  %v114_v12 = vmul.f32 3.8918573e-05, %v102_v10 }
  0x9e   :  { %v104_v13 = vadd.f32 0.00028619796, %v103_v11  ;;  %v115_v14 = vadd.f32 0.001143296, %v114_v12 }
  0xa0   :  { %v105_v15 = vmul.f32 %v104_v13, %v102_v10  ;;  %v116_v16 = vmul.f32 %v115_v14, %v102_v10 }
  0xa2   :  { %v117_v19 = vadd.f32 0.014752088, %v116_v16  ;;  %v106_v20 = vadd.f32 0.0036580483, %v105_v15 }
  0xa4   :  { %v118_v22 = vmul.f32 %v117_v19, %v102_v10  ;;  %v107_v25 = vmul.f32 %v106_v20, %v102_v10 }
  0xa6   :  { %v119_v24 = vadd.f32 0.112945676, %v118_v22  ;;  %v108_v28 = vadd.f32 0.05243302, %v107_v25 }
  0xa8   :  { %v120_v26 = vmul.f32 %v119_v24, %v102_v10  ;;  %v109_v31 = vmul.f32 %v108_v28, %v102_v10 }
  0xaa   :  { %v121_v27 = vadd.f32 0.4994258, %v120_v26  ;;  %v110_v32 = vadd.f32 0.18741608, %v109_v31 }
  0xac   :  { %v122_v29 = vmul.f32 %v121_v27, %v102_v10  ;;  %v111_v34 = vmul.f32 %v110_v32, %v102_v10 }
  0xae   :  { %v123_v30 = vadd.f32 1.0, %v122_v29  ;;  %v112_v38 = vadd.f32 1.1283791, %v111_v34 }
  0xb0   :  { %204 = vrcp.f32 %v123_v30  ;;  %v135_v37 = vand.u32 2147483648, %v123_v30  ;;  %v133_v40 = vand.u32 2147483647, %v123_v30  ;;  %vm129_vm2 = vweird.f32 %v123_v30 }
  0xb1   :  { %v113_v43 = vmul.f32 %v112_v38, %v100_v8 }
  0xb2   :  { %v136_v42 = vor.u32 1.1754944e-38, %v135_v37  ;;  %vm134_vm4 = vcmp.eq.f32.partialorder %v133_v40, 8.507059e+37 }
  0xb6   :  { %v205_v33 = vpop.eup %204 }
  0xb7   :  { %v125_v35 = vmul.f32 %v205_v33, %v123_v30  ;;  %vm130_vm1 = vweird.f32 %v205_v33 }
  0xb8   :  { %vm131_vm3 = vmor %vm129_vm2, %vm130_vm1 }
  0xb9   :  { %v126_v36 = vsub.f32 1.0, %v125_v35 }
  0xbb   :  { %v127_v39 = vmul.f32 %v205_v33, %v126_v36 }
  0xbd   :  { %v128_v41 = vadd.f32 %v205_v33, %v127_v39 }
  0xbf   :  { %v132_v44 = vsel %vm131_vm3, %v205_v33, %v128_v41 }
  0xc0   :  { %v137_v45 = vsel %vm134_vm4, %v136_v42, %v132_v44 }
  0xc1   :  { %v138_v46 = vmul.f32 %v137_v45, %v113_v43 }
  0xc3   :  { %v194_v47 = vclamps-f32 %v138_v46, 1.0 }
  0xc5   :  { %v141_v49 = vadd.f32 1.0, %v194_v47 }
  0xc7   :  { %v142_v50 = vmul.f32 %v141_v49, %v99_v48 }
  0xc9   :  { %195 = vmatmul.msk.f32.vlgmr.msra.gmra.mxu1 %vm75_vm0, %v142_v50 }
 0x146   :  { %v171_v52 = vpop.f32.mrf.mxu1 }
 0x147   :  { %v172_v53 = vadd.f32 %v203_v51, %v171_v52 }
 0x149   :  { %174 = vst [vmem:[#allocation8] sm:$0xff] %v172_v53 }
 0x14a   :  { %185 = dma.vmem_to_hbm [thread:$0]  %s181_s11, 128, %s183_s14, [#allocation4]  }
 0x14b   :  { %306 = dma.done.wait [#allocation4], 128  }
 0x14c   :  { %307 = vsyncadd [#allocation4], 4294967168 }
 0x14d   :  { %190 = vsyncpa [#allocation3], 1 }
 0x14e   :  { %191 = vsyncpa [#allocation6], 1 }
 0x14f   :  { %192 = vsyncpa [#allocation4], 1 }

</bundles_post_ra>
